<compile_context>
chip_gen: v7x
topology: tpu7x:2x2x1
jax: 0.10.0
libtpu: 0.0.40
codegen_flags: <defaults>
</compile_context>

<pallas_src>
import jax
import jax.numpy as jnp
from jax.experimental import pallas as pl
from jax.experimental.pallas import tpu as pltpu


LANE_PAD = 128  # lane (feature) pad unit; works on v5e/v6e/v7x


def _round_up(n, m):
    return (n + m - 1) // m * m


# ---------------------------------------------------------------------------
# Hardware-aware knobs
# ---------------------------------------------------------------------------

def _device_kind():
    try:
        return jax.devices()[0].device_kind.lower()
    except Exception:
        return ""


def _tensorcores_per_device():
    kind = _device_kind()
    # v5e / v6e: single TensorCore per chip. v7x (2 TCs) and megacore parts
    # benefit from >= 2 batch tiles on the "parallel" axis.
    if "v5 lite" in kind or "v5e" in kind or "v6" in kind:
        return 1
    return 2


def _vmem_budget_bytes():
    kind = _device_kind()
    if "v7" in kind:
        return 48 * 1024 * 1024   # 64 MiB physical per TC -> leave headroom
    if "v5" in kind or "v6" in kind:
        return 96 * 1024 * 1024   # 128 MiB physical
    return 32 * 1024 * 1024       # conservative default (older gens / unknown)


# ---------------------------------------------------------------------------
# Fused kernel: fc1 + ReLU, then the folded affine tail
# ---------------------------------------------------------------------------

def _fused_decoder_kernel(x_ref, w1_ref, b1_ref, wc_ref, bc_ref, o_ref):
    """x: [tm, K] bf16. Weights bf16, biases f32. All accumulation in f32."""
    x = x_ref[...]                                                     # bf16
    # Mlp.fc1 + ReLU (all branches at once; W1 column-concatenated)
    h = jnp.dot(x, w1_ref[...], preferred_element_type=jnp.float32) + b1_ref[...]
    h = jnp.maximum(h, 0.0)
    # Folded tail (fc2 @ W3 @ W4, biases pre-composed) -> lane-dense out slab
    out = jnp.dot(h.astype(jnp.bfloat16), wc_ref[...],
                  preferred_element_type=jnp.float32) + bc_ref[...]
    o_ref[...] = out.astype(o_ref.dtype)


# ---------------------------------------------------------------------------
# Tile selection under an explicit VMEM budget
# ---------------------------------------------------------------------------

def _select_tiles(B, K, hp, op, out_bytes, budget, n_cores):
    b16 = max(_round_up(B, 16), 16)        # bf16 sublane packing -> multiples of 16

    def footprint(tm, tn):
        resident = (K * hp * 2 + hp * 4) * 2          # w1 bf16 + b1 f32, 2 buffers
        wc = hp * tn * 2 * 2                          # folded weight tile, 2 buffers
        bc = tn * 4 * 2
        xin = tm * K * 2 * 2
        out = tm * tn * out_bytes * 2
        inter = tm * (hp * 6 + tn * 4)                # h f32 + bf16 copy + pre-cast out
        return resident + wc + bc + xin + out + inter

    def pick_tm(limit):
        if b16 <= limit:
            return b16                                 # one exact tile, zero waste
        best = None
        for cand in range(limit, 15, -16):             # minimise pad waste (item 9)
            waste = _round_up(b16, cand) - b16
            if best is None or waste < best[0]:
                best = (waste, cand)
        return best[1]

    tn = op                                            # full output width if it fits
    tm = pick_tm(min(512, b16))                        # large batch tiles (item 2)

    while footprint(tm, tn) > budget:
        if tn >= 2 * LANE_PAD:
            tn = _round_up(tn // 2, LANE_PAD)          # column-tile Wc/out (item 6)
        elif tm > 16:
            tm = pick_tm(max(16, _round_up(tm // 2, 16)))
        else:
            break

    # v7x / megacore: make sure the parallel batch axis has >= 2 tiles (item 4).
    if n_cores >= 2 and b16 >= 32 and _round_up(b16, tm) // tm < 2:
        tm = max(16, _round_up(-(-b16 // 2), 16))

    return tm, tn, _round_up(b16, tm)


# ---------------------------------------------------------------------------
# Fused call
# ---------------------------------------------------------------------------

def _fused_call(x, packed, out_dtype=jnp.float32):
    """x: [B, latent] f32/bf16.  Returns [B, op] slab (out_dtype)."""
    B, K = x.shape
    w1, b1, wc, bc = packed["w1"], packed["b1"], packed["wc"], packed["bc"]
    hp = w1.shape[1]
    op = wc.shape[1]
    out_bytes = jnp.dtype(out_dtype).itemsize

    n_cores = _tensorcores_per_device()
    budget = _vmem_budget_bytes()
    tile_m, tile_n, b_pad = _select_tiles(B, K, hp, op, out_bytes, budget, n_cores)

    if b_pad != B:
        x = jnp.pad(x, ((0, b_pad - B), (0, 0)))
    x = x.astype(jnp.bfloat16)

    op_pad = _round_up(op, tile_n)
    if op_pad != op:
        wc = jnp.pad(wc, ((0, 0), (0, op_pad - op)))
        bc = jnp.pad(bc, ((0, 0), (0, op_pad - op)))

    grid = (b_pad // tile_m, op_pad // tile_n)

    flops = 2 * b_pad * (K * hp + hp * op_pad)
    bytes_accessed = (b_pad * K * 2 + K * hp * 2 + hp * 4
                      + hp * op_pad * 2 + op_pad * 4
                      + b_pad * op_pad * out_bytes)

    slab = pl.pallas_call(
        _fused_decoder_kernel,
        out_shape=jax.ShapeDtypeStruct((b_pad, op_pad), out_dtype),
        grid=grid,
        in_specs=[
            pl.BlockSpec((tile_m, K), lambda i, j: (i, 0)),    # x row tile
            pl.BlockSpec((K, hp), lambda i, j: (0, 0)),        # W1: VMEM-resident
            pl.BlockSpec((1, hp), lambda i, j: (0, 0)),        # b1: VMEM-resident
            pl.BlockSpec((hp, tile_n), lambda i, j: (0, j)),   # folded Wc: column tile
            pl.BlockSpec((1, tile_n), lambda i, j: (0, j)),    # folded bc: column tile
        ],
        out_specs=pl.BlockSpec((tile_m, tile_n), lambda i, j: (i, j)),
        compiler_params=pltpu.CompilerParams(
            dimension_semantics=("parallel", "parallel"),
            vmem_limit_bytes=budget,
        ),
        cost_estimate=pl.CostEstimate(
            flops=int(flops), transcendentals=0, bytes_accessed=int(bytes_accessed)),
    )(x, w1, b1, wc, bc)

    return slab[:B, :op]


# ---------------------------------------------------------------------------
# Parameter construction & packing (with the W2·W3·W4 fold)
# ---------------------------------------------------------------------------

def _init_linear(key, in_dim, out_dim):
    """(W_t, b) with W_t [in, out] (transposed PyTorch layout), b [1, out], f32."""
    kw, kb = jax.random.split(key)
    scale = 1.0 / jnp.sqrt(jnp.float32(in_dim))
    w_t = jax.random.uniform(kw, (in_dim, out_dim), jnp.float32, -scale, scale)
    b = jax.random.uniform(kb, (1, out_dim), jnp.float32, -scale, scale)
    return w_t, b


def init_vit_decoder_params(key, data_type, data_size, img_size, latent_dim):
    params = {"multi_decoder": [], "vit_x": None}
    keys = jax.random.split(key, len(data_type) + 1)

    h_dec = int(latent_dim * 0.25)
    for k, (_name, size) in zip(keys[:-1], zip(data_type, data_size)):
        k1, k2, k3, k4 = jax.random.split(k, 4)
        params["multi_decoder"].append((
            _init_linear(k1, latent_dim, h_dec),       # Mlp.fc1
            _init_linear(k2, h_dec, latent_dim),       # Mlp.fc2
            _init_linear(k3, latent_dim, latent_dim),  # Linear
            _init_linear(k4, latent_dim, size),        # Linear -> size
        ))

    h_img = int(latent_dim * 0.5)
    k1, k2, k3, k4 = jax.random.split(keys[-1], 4)
    params["vit_x"] = (
        _init_linear(k1, latent_dim, h_img),                # Mlp.fc1 (drop -> identity)
        _init_linear(k2, h_img, latent_dim),                # Mlp.fc2
        _init_linear(k3, latent_dim, latent_dim),           # Linear
        _init_linear(k4, latent_dim, img_size * img_size),  # Linear -> img*img
    )
    return params


def _fold_tail(branch):
    """Compose the purely-linear post-ReLU tail in f32."""
    (_W1, _B1), (W2, B2), (W3, B3), (W4, B4) = branch
    Wc = W2 @ W3 @ W4                                 # [h, out]
    Bc = B2 @ W3 @ W4 + B3 @ W4 + B4                  # [1, out]
    return Wc, Bc


def pack_decoder_params(params, lane_pad=LANE_PAD):
    """All branches packed into W1 (column-concat) + folded Wc (block-diagonal).

    Returns bf16 w1/wc, f32 b1/bc and per-branch (offset, size) output segments
    in the fused output slab (last segment = image head).
    """
    branches = list(params["multi_decoder"]) + [params["vit_x"]]

    latent = branches[0][0][0].shape[0]
    h_sizes = [br[0][0].shape[1] for br in branches]
    o_sizes = [br[3][0].shape[1] for br in branches]

    hp = _round_up(sum(h_sizes), lane_pad)
    op = _round_up(sum(o_sizes), lane_pad)

    w1 = jnp.zeros((latent, hp), jnp.float32)
    b1 = jnp.zeros((1, hp), jnp.float32)
    wc = jnp.zeros((hp, op), jnp.float32)
    bc = jnp.zeros((1, op), jnp.float32)

    segs = []
    ho = oo = 0
    for branch in branches:
        (W1, B1), _, _, (W4, _B4) = branch
        h, o = W1.shape[1], W4.shape[1]
        Wc, Bc = _fold_tail(branch)                    # compose in f32, cast once below
        w1 = w1.at[:, ho:ho + h].set(W1)
        b1 = b1.at[:, ho:ho + h].set(B1.reshape(1, -1))
        wc = wc.at[ho:ho + h, oo:oo + o].set(Wc)
        bc = bc.at[:, oo:oo + o].set(Bc.reshape(1, -1))
        segs.append((oo, o))
        ho += h
        oo += o

    return dict(
        w1=w1.astype(jnp.bfloat16), b1=b1,
        wc=wc.astype(jnp.bfloat16), bc=bc,
        segs=tuple(segs),
    )


# ---------------------------------------------------------------------------
# Forward pass
# ---------------------------------------------------------------------------

def vit_decoder_forward(x, packed, img_size, out_dtype=jnp.float32):
    """x: [B, latent] f32. Returns [ [multi_res...], img_x NCHW ]."""
    slab = _fused_call(x, packed, out_dtype=out_dtype)   # [B, op], ONE kernel
    outs = [jax.lax.slice_in_dim(slab, off, off + sz, axis=1)
            for off, sz in packed["segs"]]
    multi_res = outs[:-1]
    # `View((-1, 1, img, img))` -> metadata-only reshape of the image head.
    img_x = outs[-1].reshape(-1, 1, img_size, img_size)
    return [multi_res, img_x]


# ---------------------------------------------------------------------------
# Pure-JAX reference (mirrors the folded bf16-weight / f32-accumulate compute)
# ---------------------------------------------------------------------------

def _branch_ref(x, branch):
    (W1, B1), _, _, _ = branch
    Wc, Bc = _fold_tail(branch)

    def mm(a, w):
        return jnp.dot(a.astype(jnp.bfloat16), w.astype(jnp.bfloat16),
                       preferred_element_type=jnp.float32)

    h = jnp.maximum(mm(x, W1) + B1, 0.0)
    return mm(h, Wc) + Bc


if __name__ == "__main__":
    # Small shapes consistent with the module.
    batch = 2
    latent_dim = 32
    img_size = 16
    data_type = ["clinical", "genomic"]
    data_size = [8, 4]

    key = jax.random.PRNGKey(0)
    kx, kp = jax.random.split(key)
    x = jax.random.normal(kx, (batch, latent_dim), dtype=jnp.float32)
    params = init_vit_decoder_params(kp, data_type, data_size, img_size, latent_dim)
    packed = pack_decoder_params(params)

    multi_res, img_x = vit_decoder_forward(x, packed, img_size)
    jax.block_until_ready((multi_res, img_x))

    # Shape checks
    assert img_x.shape == (batch, 1, img_size, img_size)
    for r, s in zip(multi_res, data_size):
        assert r.shape == (batch, s)

    # Numerical check against per-branch pure-JAX reference (same folded bf16 weights)
    for r, branch in zip(multi_res, params["multi_decoder"]):
        ref = _branch_ref(x, branch)
        assert jnp.allclose(r, ref, atol=5e-3, rtol=5e-3), "branch mismatch"
    img_ref = _branch_ref(x, params["vit_x"]).reshape(-1, 1, img_size, img_size)
    assert jnp.allclose(img_x, img_ref, atol=5e-3, rtol=5e-3), "image head mismatch"

    print("KERNEL_OK")
</pallas_src>

<mosaic_0001>
module attributes {stable_mosaic.version = 11 : i64} {
  func.func @_fused_decoder_kernel(%arg0: i32, %arg1: i32, %arg2: memref<16x32xbf16, #tpu.memory_space<vmem>>, %arg3: memref<32x128xbf16, #tpu.memory_space<vmem>>, %arg4: memref<1x128xf32, #tpu.memory_space<vmem>>, %arg5: memref<128x384xbf16, #tpu.memory_space<vmem>>, %arg6: memref<1x384xf32, #tpu.memory_space<vmem>>, %arg7: memref<16x384xf32, #tpu.memory_space<vmem>>) attributes {dimension_semantics = [#tpu.dimension_semantics<parallel>, #tpu.dimension_semantics<parallel>], iteration_bounds = array<i64: 1, 1>, scalar_prefetch = 0 : i64, scratch_operands = 0 : i64, tpu.core_type = #tpu.core_type<tc>, window_params = [{transform_indices = @transform_0, window_bounds = array<i64: 16, 32>}, {pipeline_mode = #tpu.pipeline_mode<synchronous>, transform_indices = @transform_1, window_bounds = array<i64: 32, 128>}, {pipeline_mode = #tpu.pipeline_mode<synchronous>, transform_indices = @transform_2, window_bounds = array<i64: 1, 128>}, {transform_indices = @transform_3, window_bounds = array<i64: 128, 384>}, {transform_indices = @transform_4, window_bounds = array<i64: 1, 384>}, {transform_indices = @transform_5, window_bounds = array<i64: 16, 384>}]} {
    %c0 = arith.constant 0 : index
    %c0_0 = arith.constant 0 : index
    %0 = vector.load %arg2[%c0, %c0_0] : memref<16x32xbf16, #tpu.memory_space<vmem>>, vector<16x32xbf16>
    %c0_1 = arith.constant 0 : index
    %c0_2 = arith.constant 0 : index
    %1 = vector.load %arg3[%c0_1, %c0_2] : memref<32x128xbf16, #tpu.memory_space<vmem>>, vector<32x128xbf16>
    %cst = arith.constant dense<0.000000e+00> : vector<16x128xf32>
    %2 = tpu.matmul %0, %1, %cst {dimension_numbers = #tpu.dot_dimension_numbers<[1], [0], [0], [1], [0, 0, 1, 1], [], []>} : vector<16x32xbf16>, vector<32x128xbf16>, vector<16x128xf32> -> vector<16x128xf32>
    %c0_3 = arith.constant 0 : index
    %c0_4 = arith.constant 0 : index
    %3 = vector.load %arg4[%c0_3, %c0_4] : memref<1x128xf32, #tpu.memory_space<vmem>>, vector<1x128xf32>
    %4 = vector.broadcast %3 : vector<1x128xf32> to vector<16x128xf32>
    %5 = arith.addf %2, %4 : vector<16x128xf32>
    %cst_5 = arith.constant 0.000000e+00 : f32
    %6 = vector.broadcast %cst_5 : f32 to vector<16x128xf32>
    %7 = arith.maximumf %5, %6 : vector<16x128xf32>
    %8 = arith.truncf %7 : vector<16x128xf32> to vector<16x128xbf16>
    %c0_6 = arith.constant 0 : index
    %c0_7 = arith.constant 0 : index
    %9 = vector.load %arg5[%c0_6, %c0_7] : memref<128x384xbf16, #tpu.memory_space<vmem>>, vector<128x384xbf16>
    %cst_8 = arith.constant dense<0.000000e+00> : vector<16x384xf32>
    %10 = tpu.matmul %8, %9, %cst_8 {dimension_numbers = #tpu.dot_dimension_numbers<[1], [0], [0], [1], [0, 0, 1, 1], [], []>} : vector<16x128xbf16>, vector<128x384xbf16>, vector<16x384xf32> -> vector<16x384xf32>
    %c0_9 = arith.constant 0 : index
    %c0_10 = arith.constant 0 : index
    %11 = vector.load %arg6[%c0_9, %c0_10] : memref<1x384xf32, #tpu.memory_space<vmem>>, vector<1x384xf32>
    %12 = vector.broadcast %11 : vector<1x384xf32> to vector<16x384xf32>
    %13 = arith.addf %10, %12 : vector<16x384xf32>
    %c0_11 = arith.constant 0 : index
    %c0_12 = arith.constant 0 : index
    %14 = vector.load %arg7[%c0_11, %c0_12] : memref<16x384xf32, #tpu.memory_space<vmem>>, vector<16x384xf32>
    tpu.vector_store %arg7[%c0_11, %c0_12], %13 {strides = array<i32>} : memref<16x384xf32, #tpu.memory_space<vmem>>, vector<16x384xf32>,
    return
  }
  func.func @transform_0(%arg0: i32, %arg1: i32) -> (i32, i32) {
    %c0_i32 = arith.constant 0 : i32
    %c0_i32_0 = arith.constant 0 : i32
    return %arg0, %c0_i32 : i32, i32
  }
  func.func @transform_1(%arg0: i32, %arg1: i32) -> (i32, i32) {
    %c0_i32 = arith.constant 0 : i32
    %c0_i32_0 = arith.constant 0 : i32
    %c0_i32_1 = arith.constant 0 : i32
    return %c0_i32, %c0_i32_0 : i32, i32
  }
  func.func @transform_2(%arg0: i32, %arg1: i32) -> (i32, i32) {
    %c0_i32 = arith.constant 0 : i32
    %c0_i32_0 = arith.constant 0 : i32
    %c0_i32_1 = arith.constant 0 : i32
    return %c0_i32, %c0_i32_0 : i32, i32
  }
  func.func @transform_3(%arg0: i32, %arg1: i32) -> (i32, i32) {
    %c0_i32 = arith.constant 0 : i32
    %c0_i32_0 = arith.constant 0 : i32
    return %c0_i32, %arg1 : i32, i32
  }
  func.func @transform_4(%arg0: i32, %arg1: i32) -> (i32, i32) {
    %c0_i32 = arith.constant 0 : i32
    %c0_i32_0 = arith.constant 0 : i32
    return %c0_i32, %arg1 : i32, i32
  }
  func.func @transform_5(%arg0: i32, %arg1: i32) -> (i32, i32) {
    %c0_i32 = arith.constant 0 : i32
    return %arg0, %arg1 : i32, i32
  }
}

</mosaic_0001>

<bundles_post_ra>
// kernel: tpu_custom_call.1
= control target key start
LH: loop header
LB: loop body
LE: loop exit
PB: predicated region body
PF: predicated region fallthrough
CT: control target
= control target key end

     0   :  { %10 = vsyncpa [#allocation3], 0  ;;  %s743_s0 = inlined_call_operand.hbm [shape: bf16[16,32], index: 0, kind: input, shape index: {}]   ;;  %s744_s1 = inlined_call_operand.hbm [shape: bf16[32,128], index: 1, kind: input, shape index: {}]   ;;  %s745_s2 = inlined_call_operand.vmem [shape: f32[1,128], index: 2, kind: input, shape index: {}]   ;;  %s746_s3 = inlined_call_operand.hbm [shape: bf16[128,384], index: 3, kind: input, shape index: {}]   ;;  %s747_s4 = inlined_call_operand.vmem [shape: f32[1,384], index: 4, kind: input, shape index: {}]   ;;  %s748_s5 = inlined_call_operand.hbm [shape: f32[16,384], index: 5, kind: output, shape index: {}]  }
   0x1   :  { %11 = vsyncpa [#allocation6], 0 }
   0x2   :  { %12 = vsyncpa [#allocation4], 0  ;;  %s637_s18 = smov [#allocation5]   ;;  %s638_s20 = smov [#allocation2]  }
   0x3   :  { %s30_s19 = sshll.u32 %s637_s18, 4  ;;  %s18_s21 = sshll.u32 %s638_s20, 4  ;;  %s31_s19 = int_to_ptr.vmem [resolvable:$true] %s30_s19  ;;  %s680_s21 = int_to_ptr.vmem [resolvable:$true] %s18_s21 }
   0x4   :  { %s543_s24 = scalar_lea.hbm %s744_s1, 256 }
   0x5   :  { %p544_p0 = scmp.ne.s32.totalorder %s744_s1, %s543_s24  ;;  %p547_p1 = scmp.lt.u32.totalorder %s543_s24, %s744_s1 }
   0x7   :  { %p549_p2 = pnand %p547_p1, %p544_p0 }
   0x9   :  { %552 = shalt.err (!%p549_p2)
}
   0xa   :  { %s553_s29 = scalar_lea.vmem %s31_s19, 256  ;;  %p558_p4 = scmp.lt.s32.totalorder %s31_s19, %s31_s19 }
   0xb   :  { %p554_p3 = scmp.ne.s32.totalorder %s31_s19, %s553_s29  ;;  %p559_p5 = scmp.lt.s32.totalorder %s553_s29, %s553_s29 }
   0xd   :  { %p560_p6 = por %p559_p5, %p558_p4 }
   0xf   :  { %p561_p7 = pnand %p560_p6, %p554_p3 }
  0x11   :  { %564 = shalt.err (!%p561_p7)
}
  0x12   :  { %s639_s30 = smov 64   ;;  %s640_s6 = smov 4  }
  0x13   :  { %36 = dma.hbm_to_vmem [thread:$0]  %s744_s1, 256, %s31_s19, [#allocation6], %s639_s30, %s639_s30, %s640_s6  }
  0x14   :  { %s565_s11 = scalar_lea.hbm %s743_s0, 128 }
  0x15   :  { %p566_p8 = scmp.ne.s32.totalorder %s743_s0, %s565_s11  ;;  %p569_p9 = scmp.lt.u32.totalorder %s565_s11, %s743_s0 }
  0x17   :  { %p571_p10 = pnand %p569_p9, %p566_p8 }
  0x19   :  { %574 = shalt.err (!%p571_p10)
}
  0x1a   :  { %s575_s16 = scalar_lea.vmem %s680_s21, 128  ;;  %p580_p12 = scmp.lt.s32.totalorder %s680_s21, %s680_s21 }
  0x1b   :  { %p576_p11 = scmp.ne.s32.totalorder %s680_s21, %s575_s16  ;;  %p581_p13 = scmp.lt.s32.totalorder %s575_s16, %s575_s16 }
  0x1d   :  { %p582_p0 = por %p581_p13, %p580_p12 }
  0x1f   :  { %p583_p1 = pnand %p582_p0, %p576_p11 }
  0x21   :  { %586 = shalt.err (!%p583_p1)
}
  0x22   :  { %24 = dma.hbm_to_vmem [thread:$0]  %s743_s0, 128, %s680_s21, [#allocation3], %s639_s30, %s639_s30, %s640_s6  }
  0x23   :  { %s641_s18 = smov [#allocation7]   ;;  %s587_s23 = scalar_lea.hbm %s746_s3, 3072 }
  0x24   :  { %s44_s19 = sshll.u32 %s641_s18, 4  ;;  %p588_p2 = scmp.ne.s32.totalorder %s746_s3, %s587_s23  ;;  %s45_s19 = int_to_ptr.vmem [resolvable:$true] %s44_s19 }
  0x25   :  { %p591_p3 = scmp.lt.u32.totalorder %s587_s23, %s746_s3 }
  0x27   :  { %p593_p4 = pnand %p591_p3, %p588_p2 }
  0x29   :  { %596 = shalt.err (!%p593_p4)
}
  0x2a   :  { %s597_s28 = scalar_lea.vmem %s45_s19, 3072  ;;  %p602_p6 = scmp.lt.s32.totalorder %s45_s19, %s45_s19 }
  0x2b   :  { %p598_p5 = scmp.ne.s32.totalorder %s45_s19, %s597_s28  ;;  %p603_p7 = scmp.lt.s32.totalorder %s597_s28, %s597_s28 }
  0x2d   :  { %p604_p8 = por %p603_p7, %p602_p6 }
  0x2f   :  { %p605_p9 = pnand %p604_p8, %p598_p5 }
  0x31   :  { %608 = shalt.err (!%p605_p9)
}
  0x32   :  { %s642_s0 = smov 192   ;;  %s643_s21 = smov 12  }
  0x33   :  { %50 = dma.hbm_to_vmem [thread:$0]  %s746_s3, 3072, %s45_s19, [#allocation6], %s642_s0, %s642_s0, %s643_s21  }
  0x34   :  { %631 = dma.done.wait [#allocation3], 128  }
  0x35   :  { %632 = vsyncadd [#allocation3], 4294967168 }
  0x36   :  { %633 = dma.done.wait [#allocation6], 3328  }
  0x37   :  { %634 = vsyncadd [#allocation6], 4294963968  ;;  %v644_v0 = vmov 0.0   ;;  %vm645_vm0 = vmmov 0   ;;  %v508_v1 = vld [vmem:[#allocation5] sm:$0xff]   ;;  %v509_v2 = vld [vmem:[#allocation5 + $0x8] sm:$0xff]   ;;  %v175_v39 = vlaneseq }
  0x38   :  { %467 = vmatprep.subr.bf16.mxu0 %v644_v0  ;;  %471 = vmatprep.mubr.msk.bf16.mxu0 %vm645_vm0, %v644_v0  ;;  %v510_v3 = vld [vmem:[#allocation2] sm:$0xff]   ;;  %v511_v4 = vld [vmem:[#allocation7 + $0x4] ss:$12 sps:$4 sm:$0xff]   ;;  %vm93_vm1 = vcmask 261120   ;;  %v519_v9 = vld [vmem:[#allocation7 + $0x34] ss:$12 sps:$4 sm:$0xff]  }
  0x39   :  { %468 = vmatpush3.bf16.msra.mxu0 %v508_v1  ;;  %v513_v5 = vld [vmem:[#allocation7] ss:$12 sps:$4 sm:$0xff]   ;;  %318 = vmatprep.subr.bf16.mxu1 %v511_v4  ;;  %v514_v6 = vld [vmem:[#allocation7 + $0x8] ss:$12 sps:$4 sm:$0xff]   ;;  %v517_v8 = vld [vmem:[#allocation7 + $0x18] ss:$12 sps:$4 sm:$0xff]  }
  0x3a   :  { %469 = vmatprep.subr.bf16.mxu0 %v644_v0  ;;  %319 = vmatpush1.bf16.msra.mxu1 %v513_v5  ;;  %v515_v7 = vld [vmem:[#allocation7 + $0x1c] ss:$12 sps:$4 sm:$0xff]   ;;  %v518_v10 = vld [vmem:[#allocation7 + $0x20] ss:$12 sps:$4 sm:$0xff]   ;;  %v522_v13 = vld [vmem:[#allocation7 + $0x38] ss:$12 sps:$4 sm:$0xff]  }
  0x3b   :  { %320 = vmatprep.subr.bf16.mxu1 %v515_v7  ;;  %v521_v11 = vld [vmem:[#allocation7 + $0x30] ss:$12 sps:$4 sm:$0xff]   ;;  %v523_v12 = vld [vmem:[#allocation7 + $0x4c] ss:$12 sps:$4 sm:$0xff]   ;;  %v525_v14 = vld [vmem:[#allocation7 + $0x48] ss:$12 sps:$4 sm:$0xff]  }
  0x3c   :  { %v527_v15 = vld [vmem:[#allocation7 + $0x64] ss:$12 sps:$4 sm:$0xff]   ;;  %v529_v17 = vld [vmem:[#allocation7 + $0x60] ss:$12 sps:$4 sm:$0xff]   ;;  %v531_v18 = vld [vmem:[#allocation7 + $0x7c] ss:$12 sps:$4 sm:$0xff]  }
  0x3d   :  { %470 = vmatpush3.bf16.msra.mxu0 %v509_v2  ;;  %v526_v16 = vld [vmem:[#allocation7 + $0x50] ss:$12 sps:$4 sm:$0xff]   ;;  %v530_v19 = vld [vmem:[#allocation7 + $0x68] ss:$12 sps:$4 sm:$0xff]   ;;  %v533_v20 = vld [vmem:[#allocation7 + $0x78] ss:$12 sps:$4 sm:$0xff]  }
  0x3e   :  { %475 = vmatprep.subr.bf16.mxu0 %v644_v0  ;;  %321 = vmatpush1.bf16.msra.mxu1 %v517_v8  ;;  %v534_v21 = vld [vmem:[#allocation7 + $0x80] ss:$12 sps:$4 sm:$0xff]   ;;  %v537_v23 = vld [vmem:[#allocation7 + $0x90] ss:$12 sps:$4 sm:$0xff]   ;;  %v538_v24 = vld [vmem:[#allocation7 + $0x98] ss:$12 sps:$4 sm:$0xff]  }
  0x3f   :  { %322 = vmatprep.subr.bf16.mxu1 %v519_v9  ;;  %v535_v22 = vld [vmem:[#allocation7 + $0x94] ss:$12 sps:$4 sm:$0xff]   ;;  %v539_v25 = vld [vmem:[#allocation7 + $0xac] ss:$12 sps:$4 sm:$0xff]   ;;  %v542_v27 = vld [vmem:[#allocation7 + $0xb0] ss:$12 sps:$4 sm:$0xff]  }
  0x40   :  { %472 = vmatmul.mubr.msk.bf16.vlgmr.msra.gmra.mrb[0].mxu0 %vm93_vm1, %v510_v3  ;;  %v541_v26 = vld [vmem:[#allocation7 + $0xa8] ss:$12 sps:$4 sm:$0xff]   ;;  %v646_v28 = vmov 0   ;;  %v176_v40 = vshrl.u32 %v175_v39, 7 }
  0x41   :  { %476 = vmatpush3.bf16.msra.mxu0 %v514_v6  ;;  %491 = vmatprep.mubr.msk.bf16.mxu0 %vm645_vm0, %v644_v0  ;;  %v426_v29 = vld [vmem:[%s745_s2] ss:$0 sm:$0xff]  ;;  %s647_s2 = smov [#allocation8]  }
  0x42   :  { %477 = vmatprep.subr.bf16.mxu0 %v644_v0  ;;  %323 = vmatpush1.bf16.msra.mxu1 %v521_v11  ;;  %v177_v41 = vsub.s32 0, %v176_v40  ;;  %v185_v42 = vsub.s32 2, %v176_v40  ;;  %v173_v43 = vld [vmem:[%s747_s4] sm:$0x7]  ;;  %v181_v44 = vsub.s32 1, %v176_v40  ;;  %s413_s9 = sshll.u32 %s647_s2, 4  ;;  %s414_s9 = int_to_ptr.vmem [resolvable:$true] %s413_s9 }
  0x43   :  { %324 = vmatprep.subr.bf16.mxu1 %v523_v12  ;;  %350 = vmatprep.mubr.bf16.mxu1 %v646_v28  ;;  %s609_s4 = scalar_lea.vmem %s414_s9, 768  ;;  %p614_p11 = scmp.lt.s32.totalorder %s414_s9, %s414_s9 }
  0x44   :  { %v178_v45 = vrot.slane %v173_v43, %v177_v41  ;;  %v186_v46 = vrot.slane %v173_v43, %v185_v42  ;;  %v182_v47 = vrot.slane %v173_v43, %v181_v44  ;;  %p610_p10 = scmp.ne.s32.totalorder %s414_s9, %s609_s4  ;;  %p615_p12 = scmp.lt.s32.totalorder %s609_s4, %s609_s4 }
  0x45   :  { %478 = vmatpush3.bf16.msra.mxu0 %v518_v10 }
  0x46   :  { %479 = vmatprep.subr.bf16.mxu0 %v644_v0  ;;  %325 = vmatpush1.bf16.msra.mxu1 %v525_v14  ;;  %p616_p13 = por %p615_p12, %p614_p11 }
  0x47   :  { %326 = vmatprep.subr.bf16.mxu1 %v527_v15 }
  0x48   :  { %p617_p0 = pnand %p616_p13, %p610_p10 }
  0x49   :  { %480 = vmatpush3.bf16.msra.mxu0 %v522_v13 }
  0x4a   :  { %481 = vmatprep.subr.bf16.mxu0 %v644_v0  ;;  %327 = vmatpush1.bf16.msra.mxu1 %v529_v17 }
  0x4b   :  { %328 = vmatprep.subr.bf16.mxu1 %v531_v18 }
  0x4d   :  { %482 = vmatpush3.bf16.msra.mxu0 %v526_v16 }
  0x4e   :  { %483 = vmatprep.subr.bf16.mxu0 %v644_v0  ;;  %329 = vmatpush1.bf16.msra.mxu1 %v533_v20 }
  0x4f   :  { %330 = vmatprep.subr.bf16.mxu1 %v535_v22 }
  0x51   :  { %484 = vmatpush3.bf16.msra.mxu0 %v530_v19 }
  0x52   :  { %485 = vmatprep.subr.bf16.mxu0 %v644_v0  ;;  %331 = vmatpush1.bf16.msra.mxu1 %v537_v23 }
  0x53   :  { %332 = vmatprep.subr.bf16.mxu1 %v539_v25 }
  0x55   :  { %486 = vmatpush3.bf16.msra.mxu0 %v534_v21 }
  0x56   :  { %487 = vmatprep.subr.bf16.mxu0 %v644_v0  ;;  %333 = vmatpush1.bf16.msra.mxu1 %v541_v26 }
  0x59   :  { %488 = vmatpush3.bf16.msra.mxu0 %v538_v24 }
  0x5a   :  { %489 = vmatprep.subr.bf16.mxu0 %v644_v0 }
  0x5d   :  { %490 = vmatpush3.bf16.msra.mxu0 %v542_v27 }
 0x113   :  { %v131_v30 = vpop.f32.mrb[0].mxu0 }
 0x114   :  { %v132_v31 = vadd.f32 %v426_v29, %v131_v30  ;;  %v473_v32 = vpop.f32.mrb[1].mxu0 }
 0x115   :  { %v134_v33 = vpop.f32.mrb[2].mxu0 }
 0x116   :  { %v135_v34 = vadd.f32 %v426_v29, %v134_v33  ;;  %v474_v35 = vpop.f32.mrb[3].mxu0  ;;  %v138_v36 = vmax.f32 %v132_v31, 0.0 }
 0x118   :  { %v139_v37 = vmax.f32 %v135_v34, 0.0 }
 0x11a   :  { %v140_v38 = vpack.c.bf16 %v139_v37, %v138_v36 }
 0x11c   :  { %351 = vmatmul.mubr.bf16.vlgmr.msra.gmra.mrb[0].mxu1 %v140_v38  ;;  %492 = vmatmul.mubr.bf16.vlgmr.msra.gmra.mrb[4].mxu0 %v140_v38 }
 0x1ef   :  { %v352_v48 = vpop.f32.mrb[0].mxu1  ;;  %v395_v49 = vpop.f32.mrb[4].mxu0 }
 0x1f0   :  { %v353_v50 = vadd.f32 %v352_v48, %v178_v45  ;;  %v396_v51 = vadd.f32 %v395_v49, %v186_v46  ;;  %v354_v52 = vpop.f32.mrb[1].mxu1  ;;  %v493_v53 = vpop.f32.mrb[5].mxu0 }
 0x1f1   :  { %v355_v54 = vadd.f32 %v354_v52, %v182_v47  ;;  %v356_v55 = vpop.f32.mrb[2].mxu1  ;;  %v398_v56 = vpop.f32.mrb[6].mxu0 }
 0x1f2   :  { %402 = vst [vmem:[#allocation8] sm:$0xff] %v353_v50  ;;  %404 = vst [vmem:[#allocation8 + $0x10] sm:$0xff] %v396_v51  ;;  %v357_v57 = vadd.f32 %v356_v55, %v178_v45  ;;  %v399_v58 = vadd.f32 %v398_v56, %v186_v46  ;;  %v358_v59 = vpop.f32.mrb[3].mxu1  ;;  %v494_v60 = vpop.f32.mrb[7].mxu0 }
 0x1f3   :  { %403 = vst [vmem:[#allocation8 + $0x8] sm:$0xff] %v355_v54  ;;  %v359_v61 = vadd.f32 %v358_v59, %v182_v47 }
 0x1f4   :  { %405 = vst [vmem:[#allocation8 + $0x18] sm:$0xff] %v357_v57  ;;  %407 = vst [vmem:[#allocation8 + $0x28] sm:$0xff] %v399_v58 }
 0x1f5   :  { %406 = vst [vmem:[#allocation8 + $0x20] sm:$0xff] %v359_v61 }
 0x1f6   :  { %620 = shalt.err (!%p617_p0)
}
 0x1f7   :  { %s621_s12 = scalar_lea.hbm %s748_s5, 768 }
 0x1f8   :  { %p622_p1 = scmp.ne.s32.totalorder %s748_s5, %s621_s12  ;;  %p625_p2 = scmp.lt.u32.totalorder %s621_s12, %s748_s5 }
 0x1fa   :  { %p627_p3 = pnand %p625_p2, %p622_p1 }
 0x1fc   :  { %630 = shalt.err (!%p627_p3)
}
 0x1fd   :  { %s648_s1 = smov 384   ;;  %s649_s17 = smov 24  }
 0x1fe   :  { %419 = dma.vmem_to_hbm [thread:$0]  %s414_s9, 768, %s748_s5, [#allocation4], %s648_s1, %s648_s1, %s649_s17  }
 0x1ff   :  { %635 = dma.done.wait [#allocation4], 768  }
 0x200   :  { %636 = vsyncadd [#allocation4], 4294966528 }
 0x201   :  { %423 = vsyncpa [#allocation3], 1 }
 0x202   :  { %424 = vsyncpa [#allocation6], 1 }
 0x203   :  { %425 = vsyncpa [#allocation4], 1 }

</bundles_post_ra>
